<compile_context>
chip_gen: v6e
topology: v6e:2x2x1
jax: 0.10.0
libtpu: 0.0.40
codegen_flags: <defaults>
</compile_context>

<pallas_src>
import functools

import jax
import jax.numpy as jnp
import numpy as np
from jax.experimental import pallas as pl
from jax.experimental.pallas import tpu as pltpu

NODE_FEATURES = 4
HIDDEN = 32
N_NODES = 16
SLAB = 4 * HIDDEN            # 128-lane output slab width
FIN = NODE_FEATURES
H = HIDDEN
TB_MAX = 8                   # timesteps fused per grid iteration


# ----------------------------------------------------------------------------- kernel
def _gconvlstm_cell_kernel(xg_ref, h0_ref, c0_ref, wh_ref, aux_ref,
                           out_ref, h_sc, c_sc, *, tb):
    """One grid step = `tb` GConvLSTM cell steps; h/c carried in VMEM scratch."""
    step = pl.program_id(0)

    @pl.when(step == 0)
    def _():
        h_sc[...] = h0_ref[...]
        c_sc[...] = c0_ref[...]

    n = h_sc.shape[0]

    # Constants: read + broadcast ONCE per grid step (hoisted above the time loop).
    aux = aux_ref[...]                                   # [8, H]
    wci = jnp.broadcast_to(aux[0:1, :], (n, H))
    wcf = jnp.broadcast_to(aux[1:2, :], (n, H))
    wco = jnp.broadcast_to(aux[2:3, :], (n, H))
    lw = jnp.broadcast_to(aux[3:4, :], (n, H))           # Linear(32->1) weight row
    lb = jnp.broadcast_to(aux[4:5, :], (n, H))           # Linear(32->1) bias (bcast)
    wh = wh_ref[...]                                     # [H, 4H]

    h = h_sc[...]                                        # [N, H]
    c = c_sc[...]                                        # [N, H]

    # Statically-unrolled recurrence over the TB timesteps of this grid step.
    for s in range(tb):
        # xg already holds x @ Wx + b (hoisted to the wrapper); gate order (i, f, c, o).
        gates = xg_ref[s] + jnp.dot(h, wh, preferred_element_type=jnp.float32)

        i = jax.nn.sigmoid(gates[:, 0 * H:1 * H] + wci * c)
        f = jax.nn.sigmoid(gates[:, 1 * H:2 * H] + wcf * c)
        g = jnp.tanh(gates[:, 2 * H:3 * H])
        c = f * c + i * g
        o = jax.nn.sigmoid(gates[:, 3 * H:4 * H] + wco * c)
        h = o * jnp.tanh(c)

        # Linear(32 -> 1) on tanh(h): VPU multiply + XLU lane reduction (no 1-column
        # MXU matmul), then broadcast + bias.
        y_b = jnp.broadcast_to(
            jnp.sum(jnp.tanh(h) * lw, axis=-1, keepdims=True), (n, H)) + lb

        # Single lane-dense, unmasked [N, 128] store per timestep:
        #   cols 0:32 = h_t, 32:64 = c_t, 64:96 = y_t (broadcast), 96:128 = y_t (fill).
        out_ref[s] = jnp.concatenate([h, c, y_b, y_b], axis=-1)

    # Carry for the next grid step.
    h_sc[...] = h
    c_sc[...] = c


def _run_cell_grid(packed, xg_seq, h, c):
    """Run T recurrent cell steps (TB per grid iteration). Returns [T_pad, N, 128]."""
    t_total, n, g4 = xg_seq.shape
    tb = min(TB_MAX, t_total)
    num_blocks = (t_total + tb - 1) // tb
    t_pad = num_blocks * tb
    if t_pad != t_total:
        # Padded tail steps compute garbage but are never read; h_T/c_T/y are sliced
        # from real step indices in the wrapper.
        pad = jnp.zeros((t_pad - t_total, n, g4), xg_seq.dtype)
        xg_seq = jnp.concatenate([xg_seq, pad], axis=0)

    kernel = functools.partial(_gconvlstm_cell_kernel, tb=tb)
    grid_spec = pltpu.PrefetchScalarGridSpec(
        num_scalar_prefetch=0,
        grid=(num_blocks,),
        in_specs=[
            pl.BlockSpec((tb, n, 4 * H), lambda i: (i, 0, 0)),   # xg block (lane-dense)
            pl.BlockSpec((n, H), lambda i: (0, 0)),              # h0 (read at step 0)
            pl.BlockSpec((n, H), lambda i: (0, 0)),              # c0 (read at step 0)
            pl.BlockSpec((H, 4 * H), lambda i: (0, 0)),          # Wh  (VMEM-resident)
            pl.BlockSpec((8, H), lambda i: (0, 0)),              # aux (VMEM-resident)
        ],
        out_specs=pl.BlockSpec((tb, n, SLAB), lambda i: (i, 0, 0)),
        scratch_shapes=[pltpu.VMEM((n, H), jnp.float32),         # h carry
                        pltpu.VMEM((n, H), jnp.float32)],        # c carry
    )
    return pl.pallas_call(
        kernel,
        out_shape=jax.ShapeDtypeStruct((t_pad, n, SLAB), jnp.float32),
        grid_spec=grid_spec,
        compiler_params=pltpu.CompilerParams(
            dimension_semantics=("arbitrary",)),                 # time is a recurrence
    )(xg_seq, h, c, packed["wh"], packed["aux"])


# ----------------------------------------------------------------------------- params
def init_params(key, node_features=NODE_FEATURES, hidden=HIDDEN):
    """Deterministic synthetic parameters matching GConvLSTM(node_features, 32, 1) + Linear(32, 1)."""
    ks = jax.random.split(key, 32)
    it = iter(range(32))

    def nrm(shape, scale=0.1):
        return scale * jax.random.normal(ks[next(it)], shape, dtype=jnp.float32)

    p = {}
    for gate in ("i", "f", "c", "o"):
        # ChebConv(K=1): one Linear weight [out, in] (no lin bias) + ChebConv bias [out]
        p[f"conv_x_{gate}_w"] = nrm((hidden, node_features))
        p[f"conv_x_{gate}_b"] = nrm((hidden,))
        p[f"conv_h_{gate}_w"] = nrm((hidden, hidden))
        p[f"conv_h_{gate}_b"] = nrm((hidden,))
        p[f"b_{gate}"] = nrm((1, hidden))
    for gate in ("i", "f", "o"):
        p[f"w_c_{gate}"] = nrm((1, hidden))
    p["lin_w"] = nrm((1, hidden))   # torch.nn.Linear(32, 1).weight
    p["lin_b"] = nrm((1,))          # torch.nn.Linear(32, 1).bias
    return p


def pack_params(p):
    """Pack once at parameter-load time (hoisted out of the per-call jit path)."""
    gates = ("i", "f", "c", "o")
    wx = jnp.concatenate([p[f"conv_x_{g}_w"].T for g in gates], axis=1)      # [FIN, 4H]
    wh = jnp.concatenate([p[f"conv_h_{g}_w"].T for g in gates], axis=1)      # [H, 4H]
    b = jnp.concatenate(
        [(p[f"conv_x_{g}_b"] + p[f"conv_h_{g}_b"])[None, :] + p[f"b_{g}"]
         for g in gates], axis=1)                                            # [1, 4H]
    # aux [8, H]: sublane rows = (w_c_i, w_c_f, w_c_o, lin_w, lin_b broadcast, 0, 0, 0)
    aux = jnp.zeros((8, HIDDEN), jnp.float32)
    aux = aux.at[0].set(p["w_c_i"][0])
    aux = aux.at[1].set(p["w_c_f"][0])
    aux = aux.at[2].set(p["w_c_o"][0])
    aux = aux.at[3].set(p["lin_w"][0])
    aux = aux.at[4].set(jnp.full((HIDDEN,), p["lin_b"][0], dtype=jnp.float32))
    return {"wx": wx, "wh": wh, "b": b, "aux": aux}


# ----------------------------------------------------------------------------- wrappers
@jax.jit
def recurrent_gconvlstm_forward(packed, x, edge_index, edge_weight, h, c):
    """Single-step forward matching RecurrentGConvLSTM.forward -> (y, h_0, c_0)."""
    del edge_index, edge_weight   # ChebConv with K=1 never propagates over the graph.
    # Input projection hoisted out of the recurrent kernel (one XLA matmul).
    xg = x @ packed["wx"] + packed["b"]                  # [N, 4H]
    slab = _run_cell_grid(packed, xg[None], h, c)        # [1, N, 128]
    y = slab[0, :, 2 * H:2 * H + 1]
    h0 = slab[0, :, 0:H]
    c0 = slab[0, :, H:2 * H]
    return y, h0, c0


@jax.jit
def recurrent_gconvlstm_rollout(packed, x_seq, edge_index, edge_weight, h, c):
    """T-step rollout: the entire recurrence runs inside ONE pallas_call."""
    del edge_index, edge_weight
    t_total = x_seq.shape[0]
    # Batched input projection for all timesteps at once: [T*N, FIN] @ [FIN, 4H].
    xg = jnp.einsum("tnf,fg->tng", x_seq, packed["wx"]) + packed["b"]
    slab = _run_cell_grid(packed, xg, h, c)              # [T_pad, N, 128]
    y_seq = slab[:t_total, :, 2 * H:2 * H + 1]
    h_t = slab[t_total - 1, :, 0:H]
    c_t = slab[t_total - 1, :, H:2 * H]
    return y_seq, h_t, c_t


# ----------------------------------------------------------------------------- reference
def _reference_cell(params, x, h, c):
    """Plain-JAX reference of the same math (for a silent correctness check)."""
    def cheb(v, w, bias):
        return v @ w.T + bias[None, :]

    p = params
    i = jax.nn.sigmoid(cheb(x, p["conv_x_i_w"], p["conv_x_i_b"])
                       + cheb(h, p["conv_h_i_w"], p["conv_h_i_b"])
                       + p["w_c_i"] * c + p["b_i"])
    f = jax.nn.sigmoid(cheb(x, p["conv_x_f_w"], p["conv_x_f_b"])
                       + cheb(h, p["conv_h_f_w"], p["conv_h_f_b"])
                       + p["w_c_f"] * c + p["b_f"])
    t = jnp.tanh(cheb(x, p["conv_x_c_w"], p["conv_x_c_b"])
                 + cheb(h, p["conv_h_c_w"], p["conv_h_c_b"]) + p["b_c"])
    c_new = f * c + i * t
    o = jax.nn.sigmoid(cheb(x, p["conv_x_o_w"], p["conv_x_o_b"])
                       + cheb(h, p["conv_h_o_w"], p["conv_h_o_b"])
                       + p["w_c_o"] * c_new + p["b_o"])
    h_new = o * jnp.tanh(c_new)
    y = jnp.tanh(h_new) @ p["lin_w"].T + p["lin_b"][None, :]
    return y, h_new, c_new


def _reference_rollout(params, x_seq, h, c):
    def step(carry, x_t):
        h, c = carry
        y, h, c = _reference_cell(params, x_t, h, c)
        return (h, c), y
    (h, c), ys = jax.lax.scan(step, (h, c), x_seq)
    return ys, h, c


# ----------------------------------------------------------------------------- main
if __name__ == "__main__":
    key = jax.random.PRNGKey(0)
    k_p, k_x, k_h, k_c, k_w, k_seq = jax.random.split(key, 6)

    params = init_params(k_p)
    packed = pack_params(params)   # packed ONCE, outside the jit path

    x = jax.random.normal(k_x, (N_NODES, NODE_FEATURES), dtype=jnp.float32)
    h = jax.random.normal(k_h, (N_NODES, HIDDEN), dtype=jnp.float32)
    c = jax.random.normal(k_c, (N_NODES, HIDDEN), dtype=jnp.float32)

    # Small synthetic ring graph (unused by K=1 ChebConv, kept for API parity).
    n_edges = 32
    src = jnp.arange(n_edges, dtype=jnp.int32) % N_NODES
    dst = (jnp.arange(n_edges, dtype=jnp.int32) + 1) % N_NODES
    edge_index = jnp.stack([src, dst], axis=0)
    edge_weight = jax.random.uniform(k_w, (n_edges,), dtype=jnp.float32)

    # --- single-step forward (module semantics) ---------------------------------
    y, h0, c0 = recurrent_gconvlstm_forward(packed, x, edge_index, edge_weight, h, c)
    jax.block_until_ready((y, h0, c0))

    y_r, h_r, c_r = _reference_cell(params, x, h, c)
    np.testing.assert_allclose(np.asarray(y), np.asarray(y_r), rtol=1e-5, atol=1e-5)
    np.testing.assert_allclose(np.asarray(h0), np.asarray(h_r), rtol=1e-5, atol=1e-5)
    np.testing.assert_allclose(np.asarray(c0), np.asarray(c_r), rtol=1e-5, atol=1e-5)
    assert y.shape == (N_NODES, 1) and h0.shape == (N_NODES, HIDDEN) and c0.shape == (N_NODES, HIDDEN)

    # --- T-step rollout: whole recurrence inside one kernel ---------------------
    T = 8
    x_seq = jax.random.normal(k_seq, (T, N_NODES, NODE_FEATURES), dtype=jnp.float32)
    y_seq, h_T, c_T = recurrent_gconvlstm_rollout(packed, x_seq, edge_index, edge_weight, h, c)
    jax.block_until_ready((y_seq, h_T, c_T))

    y_seq_r, h_T_r, c_T_r = _reference_rollout(params, x_seq, h, c)
    np.testing.assert_allclose(np.asarray(y_seq), np.asarray(y_seq_r), rtol=1e-4, atol=1e-4)
    np.testing.assert_allclose(np.asarray(h_T), np.asarray(h_T_r), rtol=1e-4, atol=1e-4)
    np.testing.assert_allclose(np.asarray(c_T), np.asarray(c_T_r), rtol=1e-4, atol=1e-4)
    assert y_seq.shape == (T, N_NODES, 1)

    print("KERNEL_OK")
</pallas_src>

<mosaic_0001>
module attributes {stable_mosaic.version = 11 : i64} {
  func.func @_gconvlstm_cell_kernel(%arg0: i32, %arg1: memref<1x16x128xf32, #tpu.memory_space<vmem>>, %arg2: memref<16x32xf32, #tpu.memory_space<vmem>>, %arg3: memref<16x32xf32, #tpu.memory_space<vmem>>, %arg4: memref<32x128xf32, #tpu.memory_space<vmem>>, %arg5: memref<8x32xf32, #tpu.memory_space<vmem>>, %arg6: memref<1x16x128xf32, #tpu.memory_space<vmem>>, %arg7: memref<16x32xf32, #tpu.memory_space<vmem>>, %arg8: memref<16x32xf32, #tpu.memory_space<vmem>>) attributes {dimension_semantics = [#tpu.dimension_semantics<arbitrary>], iteration_bounds = array<i64: 1>, scalar_prefetch = 0 : i64, scratch_operands = 2 : i64, tpu.core_type = #tpu.core_type<tc>, window_params = [{transform_indices = @transform_0, window_bounds = array<i64: 1, 16, 128>}, {pipeline_mode = #tpu.pipeline_mode<synchronous>, transform_indices = @transform_1, window_bounds = array<i64: 16, 32>}, {pipeline_mode = #tpu.pipeline_mode<synchronous>, transform_indices = @transform_2, window_bounds = array<i64: 16, 32>}, {pipeline_mode = #tpu.pipeline_mode<synchronous>, transform_indices = @transform_3, window_bounds = array<i64: 32, 128>}, {pipeline_mode = #tpu.pipeline_mode<synchronous>, transform_indices = @transform_4, window_bounds = array<i64: 8, 32>}, {transform_indices = @transform_5, window_bounds = array<i64: 1, 16, 128>}]} {
    %c0_i32 = arith.constant 0 : i32
    %0 = arith.cmpi eq, %arg0, %c0_i32 : i32
    %1 = arith.extui %0 : i1 to i32
    %c0_i32_0 = arith.constant 0 : i32
    %2 = arith.cmpi ne, %1, %c0_i32_0 : i32
    scf.if %2 {
      %c0_22 = arith.constant 0 : index
      %c0_23 = arith.constant 0 : index
      %70 = vector.load %arg2[%c0_22, %c0_23] : memref<16x32xf32, #tpu.memory_space<vmem>>, vector<16x32xf32>
      %c0_24 = arith.constant 0 : index
      %c0_25 = arith.constant 0 : index
      %71 = vector.load %arg7[%c0_24, %c0_25] : memref<16x32xf32, #tpu.memory_space<vmem>>, vector<16x32xf32>
      tpu.vector_store %arg7[%c0_24, %c0_25], %70 {strides = array<i32>} : memref<16x32xf32, #tpu.memory_space<vmem>>, vector<16x32xf32>,
      %c0_26 = arith.constant 0 : index
      %c0_27 = arith.constant 0 : index
      %72 = vector.load %arg3[%c0_26, %c0_27] : memref<16x32xf32, #tpu.memory_space<vmem>>, vector<16x32xf32>
      %c0_28 = arith.constant 0 : index
      %c0_29 = arith.constant 0 : index
      %73 = vector.load %arg8[%c0_28, %c0_29] : memref<16x32xf32, #tpu.memory_space<vmem>>, vector<16x32xf32>
      tpu.vector_store %arg8[%c0_28, %c0_29], %72 {strides = array<i32>} : memref<16x32xf32, #tpu.memory_space<vmem>>, vector<16x32xf32>,
    } else {
    }
    %c0 = arith.constant 0 : index
    %c0_1 = arith.constant 0 : index
    %3 = vector.load %arg5[%c0, %c0_1] : memref<8x32xf32, #tpu.memory_space<vmem>>, vector<8x32xf32>
    %4 = vector.extract_strided_slice %3 {offsets = [0, 0], sizes = [1, 32], strides = [1, 1]} : vector<8x32xf32> to vector<1x32xf32>
    %5 = vector.shape_cast %4 : vector<1x32xf32> to vector<1x32xf32>
    %6 = vector.broadcast %5 : vector<1x32xf32> to vector<16x32xf32>
    %7 = vector.extract_strided_slice %3 {offsets = [1, 0], sizes = [1, 32], strides = [1, 1]} : vector<8x32xf32> to vector<1x32xf32>
    %8 = vector.shape_cast %7 : vector<1x32xf32> to vector<1x32xf32>
    %9 = vector.broadcast %8 : vector<1x32xf32> to vector<16x32xf32>
    %10 = vector.extract_strided_slice %3 {offsets = [2, 0], sizes = [1, 32], strides = [1, 1]} : vector<8x32xf32> to vector<1x32xf32>
    %11 = vector.shape_cast %10 : vector<1x32xf32> to vector<1x32xf32>
    %12 = vector.broadcast %11 : vector<1x32xf32> to vector<16x32xf32>
    %13 = vector.extract_strided_slice %3 {offsets = [3, 0], sizes = [1, 32], strides = [1, 1]} : vector<8x32xf32> to vector<1x32xf32>
    %14 = vector.shape_cast %13 : vector<1x32xf32> to vector<1x32xf32>
    %15 = vector.broadcast %14 : vector<1x32xf32> to vector<16x32xf32>
    %16 = vector.extract_strided_slice %3 {offsets = [4, 0], sizes = [1, 32], strides = [1, 1]} : vector<8x32xf32> to vector<1x32xf32>
    %17 = vector.shape_cast %16 : vector<1x32xf32> to vector<1x32xf32>
    %18 = vector.broadcast %17 : vector<1x32xf32> to vector<16x32xf32>
    %c0_2 = arith.constant 0 : index
    %c0_3 = arith.constant 0 : index
    %19 = vector.load %arg4[%c0_2, %c0_3] : memref<32x128xf32, #tpu.memory_space<vmem>>, vector<32x128xf32>
    %c0_4 = arith.constant 0 : index
    %c0_5 = arith.constant 0 : index
    %20 = vector.load %arg7[%c0_4, %c0_5] : memref<16x32xf32, #tpu.memory_space<vmem>>, vector<16x32xf32>
    %c0_6 = arith.constant 0 : index
    %c0_7 = arith.constant 0 : index
    %21 = vector.load %arg8[%c0_6, %c0_7] : memref<16x32xf32, #tpu.memory_space<vmem>>, vector<16x32xf32>
    %c0_8 = arith.constant 0 : index
    %c0_9 = arith.constant 0 : index
    %c0_10 = arith.constant 0 : index
    %22 = vector.load %arg1[%c0_8, %c0_9, %c0_10] : memref<1x16x128xf32, #tpu.memory_space<vmem>>, vector<1x16x128xf32>
    %23 = vector.shape_cast %22 : vector<1x16x128xf32> to vector<16x128xf32>
    %cst = arith.constant dense<0.000000e+00> : vector<16x128xf32>
    %24 = tpu.matmul %20, %19, %cst {dimension_numbers = #tpu.dot_dimension_numbers<[1], [0], [0], [1], [0, 0, 1, 1], [], []>} : vector<16x32xf32>, vector<32x128xf32>, vector<16x128xf32> -> vector<16x128xf32>
    %25 = arith.addf %23, %24 : vector<16x128xf32>
    %26 = vector.extract_strided_slice %25 {offsets = [0, 0], sizes = [16, 32], strides = [1, 1]} : vector<16x128xf32> to vector<16x32xf32>
    %27 = arith.mulf %6, %21 : vector<16x32xf32>
    %28 = arith.addf %26, %27 : vector<16x32xf32>
    %29 = arith.negf %28 : vector<16x32xf32>
    %30 = math.exp %29 : vector<16x32xf32>
    %cst_11 = arith.constant 1.000000e+00 : f32
    %31 = vector.broadcast %cst_11 : f32 to vector<16x32xf32>
    %32 = arith.addf %31, %30 : vector<16x32xf32>
    %33 = arith.divf %31, %32 : vector<16x32xf32>
    %34 = vector.extract_strided_slice %25 {offsets = [0, 32], sizes = [16, 32], strides = [1, 1]} : vector<16x128xf32> to vector<16x32xf32>
    %35 = arith.mulf %9, %21 : vector<16x32xf32>
    %36 = arith.addf %34, %35 : vector<16x32xf32>
    %37 = arith.negf %36 : vector<16x32xf32>
    %38 = math.exp %37 : vector<16x32xf32>
    %cst_12 = arith.constant 1.000000e+00 : f32
    %39 = vector.broadcast %cst_12 : f32 to vector<16x32xf32>
    %40 = arith.addf %39, %38 : vector<16x32xf32>
    %41 = arith.divf %39, %40 : vector<16x32xf32>
    %42 = vector.extract_strided_slice %25 {offsets = [0, 64], sizes = [16, 32], strides = [1, 1]} : vector<16x128xf32> to vector<16x32xf32>
    %43 = math.tanh %42 : vector<16x32xf32>
    %44 = arith.mulf %41, %21 : vector<16x32xf32>
    %45 = arith.mulf %33, %43 : vector<16x32xf32>
    %46 = arith.addf %44, %45 : vector<16x32xf32>
    %47 = vector.extract_strided_slice %25 {offsets = [0, 96], sizes = [16, 32], strides = [1, 1]} : vector<16x128xf32> to vector<16x32xf32>
    %48 = arith.mulf %12, %46 : vector<16x32xf32>
    %49 = arith.addf %47, %48 : vector<16x32xf32>
    %50 = arith.negf %49 : vector<16x32xf32>
    %51 = math.exp %50 : vector<16x32xf32>
    %cst_13 = arith.constant 1.000000e+00 : f32
    %52 = vector.broadcast %cst_13 : f32 to vector<16x32xf32>
    %53 = arith.addf %52, %51 : vector<16x32xf32>
    %54 = arith.divf %52, %53 : vector<16x32xf32>
    %55 = math.tanh %46 : vector<16x32xf32>
    %56 = arith.mulf %54, %55 : vector<16x32xf32>
    %57 = math.tanh %56 : vector<16x32xf32>
    %58 = arith.mulf %57, %15 : vector<16x32xf32>
    %cst_14 = arith.constant dense<0.000000e+00> : vector<16xf32>
    %59 = vector.multi_reduction <add>, %58, %cst_14 [1] : vector<16x32xf32> to vector<16xf32>
    %60 = vector.shape_cast %59 : vector<16xf32> to vector<16x1xf32>
    %61 = vector.shape_cast %60 : vector<16x1xf32> to vector<16x1xf32>
    %62 = vector.broadcast %61 : vector<16x1xf32> to vector<16x32xf32>
    %63 = arith.addf %62, %18 : vector<16x32xf32>
    %64 = tpu.concatenate %56, %46, %63, %63 in 1 : vector<16x32xf32>, vector<16x32xf32>, vector<16x32xf32>, vector<16x32xf32> -> vector<16x128xf32>
    %c0_15 = arith.constant 0 : index
    %c0_16 = arith.constant 0 : index
    %c0_17 = arith.constant 0 : index
    %65 = vector.load %arg6[%c0_15, %c0_16, %c0_17] : memref<1x16x128xf32, #tpu.memory_space<vmem>>, vector<1x16x128xf32>
    %66 = vector.shape_cast %65 : vector<1x16x128xf32> to vector<16x128xf32>
    %67 = vector.shape_cast %64 : vector<16x128xf32> to vector<1x16x128xf32>
    tpu.vector_store %arg6[%c0_15, %c0_16, %c0_17], %67 {strides = array<i32>} : memref<1x16x128xf32, #tpu.memory_space<vmem>>, vector<1x16x128xf32>,
    %c0_18 = arith.constant 0 : index
    %c0_19 = arith.constant 0 : index
    %68 = vector.load %arg7[%c0_18, %c0_19] : memref<16x32xf32, #tpu.memory_space<vmem>>, vector<16x32xf32>
    tpu.vector_store %arg7[%c0_18, %c0_19], %56 {strides = array<i32>} : memref<16x32xf32, #tpu.memory_space<vmem>>, vector<16x32xf32>,
    %c0_20 = arith.constant 0 : index
    %c0_21 = arith.constant 0 : index
    %69 = vector.load %arg8[%c0_20, %c0_21] : memref<16x32xf32, #tpu.memory_space<vmem>>, vector<16x32xf32>
    tpu.vector_store %arg8[%c0_20, %c0_21], %46 {strides = array<i32>} : memref<16x32xf32, #tpu.memory_space<vmem>>, vector<16x32xf32>,
    return
  }
  func.func @transform_0(%arg0: i32) -> (i32, i32, i32) {
    %c0_i32 = arith.constant 0 : i32
    %c0_i32_0 = arith.constant 0 : i32
    %c0_i32_1 = arith.constant 0 : i32
    return %arg0, %c0_i32, %c0_i32_0 : i32, i32, i32
  }
  func.func @transform_1(%arg0: i32) -> (i32, i32) {
    %c0_i32 = arith.constant 0 : i32
    %c0_i32_0 = arith.constant 0 : i32
    %c0_i32_1 = arith.constant 0 : i32
    return %c0_i32, %c0_i32_0 : i32, i32
  }
  func.func @transform_2(%arg0: i32) -> (i32, i32) {
    %c0_i32 = arith.constant 0 : i32
    %c0_i32_0 = arith.constant 0 : i32
    %c0_i32_1 = arith.constant 0 : i32
    return %c0_i32, %c0_i32_0 : i32, i32
  }
  func.func @transform_3(%arg0: i32) -> (i32, i32) {
    %c0_i32 = arith.constant 0 : i32
    %c0_i32_0 = arith.constant 0 : i32
    %c0_i32_1 = arith.constant 0 : i32
    return %c0_i32, %c0_i32_0 : i32, i32
  }
  func.func @transform_4(%arg0: i32) -> (i32, i32) {
    %c0_i32 = arith.constant 0 : i32
    %c0_i32_0 = arith.constant 0 : i32
    %c0_i32_1 = arith.constant 0 : i32
    return %c0_i32, %c0_i32_0 : i32, i32
  }
  func.func @transform_5(%arg0: i32) -> (i32, i32, i32) {
    %c0_i32 = arith.constant 0 : i32
    %c0_i32_0 = arith.constant 0 : i32
    %c0_i32_1 = arith.constant 0 : i32
    return %arg0, %c0_i32, %c0_i32_0 : i32, i32, i32
  }
}

</mosaic_0001>

<bundles_post_ra>
// kernel: recurrent_gconvlstm_forward.1
= control target key start
LH: loop header
LB: loop body
LE: loop exit
PB: predicated region body
PF: predicated region fallthrough
CT: control target
= control target key end

     0   :  { %10 = vsyncpa [#allocation5], 0  ;;  %s608_s0 = inlined_call_operand.vmem [shape: f32[1,16,128], index: 0, kind: input, shape index: {}]   ;;  %s609_s1 = inlined_call_operand.vmem [shape: f32[16,32], index: 1, kind: input, shape index: {}]   ;;  %s610_s2 = inlined_call_operand.vmem [shape: f32[16,32], index: 2, kind: input, shape index: {}]   ;;  %s611_s3 = inlined_call_operand.hbm [shape: f32[32,128], index: 3, kind: input, shape index: {}]   ;;  %s612_s4 = inlined_call_operand.hbm [shape: f32[8,32], index: 4, kind: input, shape index: {}]   ;;  %s613_s5 = inlined_call_operand.vmem [shape: f32[1,16,128], index: 5, kind: output, shape index: {}]  }
   0x1   :  { %11 = vsyncpa [#allocation7], 0  ;;  %s468_s18 = smov [#allocation4]  }
   0x2   :  { %s23_s19 = sshll.u32 %s468_s18, 4  ;;  %s24_s19 = int_to_ptr.vmem [resolvable:$true] %s23_s19 }
   0x3   :  { %s432_s20 = scalar_lea.vmem %s24_s19, 512  ;;  %p437_p1 = scmp.lt.s32.totalorder %s24_s19, %s24_s19 }
   0x4   :  { %p433_p0 = scmp.ne.s32.totalorder %s24_s19, %s432_s20  ;;  %p438_p2 = scmp.lt.s32.totalorder %s432_s20, %s432_s20 }
   0x6   :  { %p439_p3 = por %p438_p2, %p437_p1 }
   0x8   :  { %p440_p4 = pnand %p439_p3, %p433_p0 }
   0xa   :  { %443 = shalt.err (!%p440_p4)
}
   0xb   :  { %s469_s21 = smov 128   ;;  %s470_s22 = smov 8  }
   0xc   :  { %29 = dma.hbm_to_vmem [thread:$0]  %s611_s3, 512, %s24_s19, [#allocation5], %s469_s21, %s469_s21, %s470_s22  }
   0xd   :  { %s471_s25 = smov [#allocation6]  }
   0xe   :  { %s36_s26 = sshll.u32 %s471_s25, 4  ;;  %s37_s26 = int_to_ptr.vmem [resolvable:$true] %s36_s26 }
   0xf   :  { %s452_s27 = scalar_lea.vmem %s37_s26, 128  ;;  %p457_p6 = scmp.lt.s32.totalorder %s37_s26, %s37_s26 }
  0x10   :  { %p453_p5 = scmp.ne.s32.totalorder %s37_s26, %s452_s27  ;;  %p458_p7 = scmp.lt.s32.totalorder %s452_s27, %s452_s27 }
  0x12   :  { %p459_p8 = por %p458_p7, %p457_p6 }
  0x14   :  { %p460_p9 = pnand %p459_p8, %p453_p5 }
  0x16   :  { %463 = shalt.err (!%p460_p9)
}
  0x17   :  { %39 = dma.hbm_to_vmem [thread:$0]  %s612_s4, 128, %s37_s26, [#allocation7]  }
  0x18   :  { %464 = dma.done.wait [#allocation5], 512  }
  0x19   :  { %465 = vsyncadd [#allocation5], 4294966784 }
  0x1a   :  { %466 = dma.done.wait [#allocation7], 128  }
  0x1b   :  { %467 = vsyncadd [#allocation7], 4294967168  ;;  %v60_v0 = vlaneseq  ;;  %vm52_vm0 = vcmask 261120   ;;  %v83_v2 = vld [vmem:[#allocation4 + $0x18] sm:$0xff]  ;;  %v82_v3 = vld [vmem:[#allocation4 + $0x10] sm:$0xff]  ;;  %s473_s14 = smov 64  }
  0x1c   :  { %370 = vmatprep.subr.mxu0 %v83_v2  ;;  %v50_v4 = vld [vmem:[%s609_s1] sm:$0xff]  ;;  %v51_v5 = vld [vmem:[%s609_s1 + $0x8] sm:$0xff]  ;;  %s472_s1 = smov 32   ;;  %vm338_vm1 = vcmask 523264   ;;  %vm341_vm2 = vcmask 785408  }
  0x1d   :  { %v511_v1 = vshrl.u32 %v60_v0, 7  ;;  %371 = vmatpush3.msra.mxu0 %v83_v2  ;;  %v81_v6 = vld [vmem:[#allocation4 + $0x8] sm:$0xff]  ;;  %53 = vst.msk [vmem:[#allocation2] sm:$0xff] %vm52_vm0, %v50_v4  ;;  %54 = vst.msk [vmem:[#allocation2 + $0x8] sm:$0xff] %vm52_vm0, %v51_v5  ;;  %v55_v7 = vld [vmem:[%s610_s2] sm:$0xff] }
  0x1e   :  { %v56_v8 = vld [vmem:[%s610_s2 + $0x8] sm:$0xff]  ;;  %372 = vmatprep.subr.mxu0 %v82_v3  ;;  %57 = vst.msk [vmem:[#allocation3] sm:$0xff] %vm52_vm0, %v55_v7  ;;  %v80_v10 = vld [vmem:[#allocation4] sm:$0xff] }
  0x1f   :  { %v66_v9 = vsub.s32 1, %v511_v1  ;;  %58 = vst.msk [vmem:[#allocation3 + $0x8] sm:$0xff] %vm52_vm0, %v56_v8  ;;  %373 = vmatpush3.msra.mxu0 %v82_v3  ;;  %v530_v11 = vld [vmem:[#allocation6] sm:$0xff]  ;;  %v89_v22 = vld [vmem:[%s608_s0 + $0x8] sm:$0xff]  ;;  %v62_v27 = vsub.s32 0, %v511_v1  ;;  %v70_v2 = vsub.s32 2, %v511_v1 }
  0x20   :  { %374 = vmatprep.subr.mxu0 %v81_v6  ;;  %v88_v20 = vld [vmem:[%s608_s0] sm:$0xff]  ;;  %s474_s0 = smov 96  }
  0x21   :  { %375 = vmatpush3.msra.mxu0 %v81_v6  ;;  %v67_v12 = vrot.slane %v530_v11, %v66_v9  ;;  %v63_v28 = vrot.slane %v530_v11, %v62_v27  ;;  %v71_v3 = vrot.slane %v530_v11, %v70_v2  ;;  %v74_v6 = vsub.s32 3, %v511_v1 }
  0x22   :  { %376 = vmatprep.subr.mxu0 %v80_v10 }
  0x23   :  { %377 = vmatpush3.msra.mxu0 %v80_v10  ;;  %v75_v10 = vrot.slane %v530_v11, %v74_v6 }
  0x24   :  { %v84_v13 = vld [vmem:[#allocation2] sm:$0xff]  ;;  %v85_v14 = vld [vmem:[#allocation2 + $0x8] sm:$0xff] }
  0x25   :  { %378 = vmatprep.mubr.msk.f32.mxu0 %vm52_vm0, %v84_v13  ;;  %v86_v15 = vld [vmem:[#allocation3] sm:$0xff] }
  0x26   :  { %v87_v16 = vld [vmem:[#allocation3 + $0x8] sm:$0xff]  ;;  %379 = vmatmul.mubr.msk.f32.vlgmr.msra.gmra.mxu0 %vm52_vm0, %v85_v14  ;;  %v190_v17 = vmul.f32 %v86_v15, %v67_v12  ;;  %v174_v29 = vmul.f32 %v86_v15, %v63_v28 }
  0x27   :  { %v191_v18 = vmul.f32 %v87_v16, %v67_v12  ;;  %v175_v30 = vmul.f32 %v87_v16, %v63_v28 }
  0x28   :  { %194 = vrot.lane.b32.xlu1 %v190_v17, %s472_s1 }
  0x2c   :  { %196 = vrot.lane.b32.xlu1 %v191_v18, %s472_s1 }
  0x30   :  { %220 = vrot.lane.b32.xlu1 %v87_v16, %s472_s1 }
  0x9a   :  { %v195_v45 = vpop.permute.xlu1 %194 }
  0x9e   :  { %v197_v46 = vpop.permute.xlu1 %196 }
  0xa2   :  { %v221_v59 = vpop.permute.xlu1 %220 }
  0xe6   :  { %v380_v19 = vpop.f32.mrf.mxu0 }
  0xe7   :  { %v546_v24 = vadd.f32 %v380_v19, %v89_v22 }
  0xe8   :  { %v163_v21 = vpop.f32.mrf.mxu0 }
  0xe9   :  { %v544_v23 = vadd.f32 %v163_v21, %v88_v20  ;;  %v177_v32 = vadd.f32 %v175_v30, %v546_v24  ;;  %v201_v48 = vadd.f32 %v197_v46, %v546_v24 }
  0xeb   :  { %388 = vtanh.f32 %v544_v23  ;;  %v176_v31 = vadd.f32 %v174_v29, %v544_v23  ;;  %v359_v34 = vmul.f32 -1.442695, %v177_v32  ;;  %v200_v47 = vadd.f32 %v195_v45, %v544_v23 }
  0xec   :  { %390 = vtanh.f32 %v546_v24  ;;  %v361_v50 = vmul.f32 -1.442695, %v201_v48 }
  0xed   :  { %v358_v33 = vmul.f32 -1.442695, %v176_v31  ;;  %v360_v49 = vmul.f32 -1.442695, %v200_v47 }
  0xef   :  { %392 = vpow2.f32 %v358_v33 }
  0xf0   :  { %394 = vpow2.f32 %v359_v34 }
  0xf8   :  { %v389_v25 = vpop.eup %388 }
  0xf9   :  { %228 = vrot.lane.b32.xlu0 %v389_v25, %s473_s14  ;;  %v391_v26 = vpop.eup %390 }
  0xfc   :  { %v393_v35 = vpop.eup %392 }
  0xfd   :  { %230 = vrot.lane.b32.xlu0 %v391_v26, %s473_s14  ;;  %v184_v36 = vadd.f32 1.0, %v393_v35  ;;  %v395_v37 = vpop.eup %394 }
  0xfe   :  { %v185_v38 = vadd.f32 1.0, %v395_v37 }
  0xff   :  { %396 = vrcp.f32 %v184_v36 }
 0x100   :  { %398 = vrcp.f32 %v185_v38  ;;  %v78_v38 = vsub.s32 4, %v511_v1 }
 0x101   :  { %218 = vrot.lane.b32.xlu0 %v86_v15, %s472_s1  ;;  %400 = vpow2.f32 %v360_v49 }
 0x102   :  { %402 = vpow2.f32 %v361_v50 }
 0x10c   :  { %v397_v39 = vpop.eup %396 }
 0x10d   :  { %v399_v42 = vpop.eup %398 }
 0x10e   :  { %v401_v51 = vpop.eup %400 }
 0x10f   :  { %v403_v52 = vpop.eup %402  ;;  %v208_v53 = vadd.f32 1.0, %v401_v51 }
 0x110   :  { %v209_v54 = vadd.f32 1.0, %v403_v52 }
 0x111   :  { %404 = vrcp.f32 %v208_v53 }
 0x112   :  { %406 = vrcp.f32 %v209_v54 }
 0x11e   :  { %v405_v56 = vpop.eup %404 }
 0x11f   :  { %v407_v58 = vpop.eup %406 }
 0x120   :  { %v225_v62 = vmul.f32 %v407_v58, %v221_v59 }
 0x16b   :  { %v229_v40 = vpop.permute.xlu0 %228 }
 0x16c   :  { %v234_v41 = vmul.f32 %v397_v39, %v229_v40  ;;  %v79_v39 = vrot.slane %v530_v11, %v78_v38 }
 0x16e   :  { %238 = vrot.lane.b32.xlu0 %v234_v41, %s472_s1 }
 0x16f   :  { %v231_v43 = vpop.permute.xlu0 %230 }
 0x170   :  { %v235_v44 = vmul.f32 %v399_v42, %v231_v43 }
 0x172   :  { %240 = vrot.lane.b32.xlu1 %v235_v44, %s472_s1 }
 0x173   :  { %v219_v55 = vpop.permute.xlu0 %218 }
 0x174   :  { %v224_v57 = vmul.f32 %v405_v56, %v219_v55 }
 0x1e0   :  { %v239_v60 = vpop.permute.xlu0 %238 }
 0x1e1   :  { %v561_v61 = vadd.f32 %v239_v60, %v224_v57 }
 0x1e3   :  { %248 = vrot.lane.b32.xlu0 %v561_v61, %s474_s0  ;;  %408 = vtanh.f32 %v561_v61 }
 0x1e4   :  { %v241_v63 = vpop.permute.xlu1 %240 }
 0x1e5   :  { %v565_v0 = vadd.f32 %v241_v63, %v225_v62 }
 0x1e7   :  { %250 = vrot.lane.b32.xlu1 %v565_v0, %s474_s0  ;;  %410 = vtanh.f32 %v565_v0 }
 0x1f0   :  { %v409_v9 = vpop.eup %408 }
 0x1f4   :  { %v411_v12 = vpop.eup %410 }
 0x255   :  { %v249_v4 = vpop.permute.xlu0 %248 }
 0x256   :  { %v254_v5 = vmul.f32 %v249_v4, %v71_v3  ;;  %348 = vst.msk [vmem:[#allocation3] sm:$0xff] %vm52_vm0, %v249_v4 }
 0x258   :  { %258 = vrot.lane.b32.xlu0 %v254_v5, %s474_s0 }
 0x259   :  { %v251_v7 = vpop.permute.xlu1 %250 }
 0x25a   :  { %v255_v8 = vmul.f32 %v251_v7, %v71_v3  ;;  %349 = vst.msk [vmem:[#allocation3 + $0x8] sm:$0xff] %vm52_vm0, %v251_v7 }
 0x25c   :  { %260 = vrot.lane.b32.xlu1 %v255_v8, %s474_s0  ;;  %282 = vrot.lane.b32.xlu0 %v409_v9, %s473_s14 }
 0x260   :  { %284 = vrot.lane.b32.xlu1 %v411_v12, %s473_s14  ;;  %293 = vrot.lane.b32.xlu0 %v75_v10, %s474_s0 }
 0x2ca   :  { %v259_v13 = vpop.permute.xlu0 %258 }
 0x2cb   :  { %v264_v14 = vadd.f32 %v259_v13, %v544_v23 }
 0x2cd   :  { %v362_v15 = vmul.f32 -1.442695, %v264_v14 }
 0x2ce   :  { %v261_v16 = vpop.permute.xlu1 %260  ;;  %v283_v26 = vpop.permute.xlu0 %282 }
 0x2cf   :  { %412 = vpow2.f32 %v362_v15  ;;  %v265_v17 = vadd.f32 %v261_v16, %v546_v24 }
 0x2d1   :  { %v363_v18 = vmul.f32 -1.442695, %v265_v17 }
 0x2d2   :  { %v285_v29 = vpop.permute.xlu1 %284  ;;  %v294_v30 = vpop.permute.xlu0 %293 }
 0x2d3   :  { %414 = vpow2.f32 %v363_v18 }
 0x2dc   :  { %v413_v19 = vpop.eup %412 }
 0x2dd   :  { %v272_v20 = vadd.f32 1.0, %v413_v19 }
 0x2df   :  { %416 = vrcp.f32 %v272_v20 }
 0x2e0   :  { %v415_v21 = vpop.eup %414 }
 0x2e1   :  { %v273_v22 = vadd.f32 1.0, %v415_v21 }
 0x2e3   :  { %418 = vrcp.f32 %v273_v22 }
 0x2ec   :  { %v417_v25 = vpop.eup %416 }
 0x2ed   :  { %v288_v27 = vmul.f32 %v417_v25, %v283_v26 }
 0x2ef   :  { %420 = vtanh.f32 %v288_v27 }
 0x2f0   :  { %v419_v28 = vpop.eup %418 }
 0x2f1   :  { %v289_v23 = vmul.f32 %v419_v28, %v285_v29 }
 0x2f3   :  { %422 = vtanh.f32 %v289_v23 }
 0x2fc   :  { %v421_v31 = vpop.eup %420 }
 0x2fd   :  { %v296_v32 = vmul.f32 %v421_v31, %v294_v30 }
 0x2ff   :  { %300 = vrot.lane.b32.xlu1 %v296_v32, %s472_s1 }
 0x300   :  { %v423_v24 = vpop.eup %422 }
 0x301   :  { %v297_v33 = vmul.f32 %v423_v24, %v294_v30 }
 0x303   :  { %302 = vrot.lane.b32.xlu0 %v297_v33, %s472_s1 }
 0x371   :  { %v301_v34 = vpop.permute.xlu1 %300 }
 0x372   :  { %v306_v35 = vsel %vm52_vm0, %v301_v34, 0.0 }
 0x373   :  { %307 = vadd.xlane.f32.xlu1 %v306_v35 }
 0x375   :  { %v303_v36 = vpop.permute.xlu0 %302 }
 0x376   :  { %v309_v37 = vsel %vm52_vm0, %v303_v36, 0.0 }
 0x377   :  { %310 = vadd.xlane.f32.xlu0 %v309_v37 }
 0x384   :  { %318 = vrot.lane.b32.xlu1 %v289_v23, %s472_s1 }
 0x38d   :  { %316 = vrot.lane.b32.xlu0 %v288_v27, %s472_s1 }
 0x3fc   :  { %v308_v40 = vpop.xlane.xlu1 %307 }
 0x3fd   :  { %v312_v41 = vadd.f32 %v308_v40, %v79_v39 }
 0x3ff   :  { %324 = vrot.lane.b32.xlu1 %v312_v41, %s473_s14 }
 0x400   :  { %v311_v42 = vpop.xlane.xlu0 %310  ;;  %v319_v43 = vpop.permute.xlu1 %318 }
 0x401   :  { %v313_v44 = vadd.f32 %v311_v42, %v79_v39  ;;  %347 = vst.msk [vmem:[#allocation2 + $0x8] sm:$0xff] %vm52_vm0, %v319_v43  ;;  %v337_v50 = vsel %vm52_vm0, %v319_v43, %v565_v0 }
 0x403   :  { %326 = vrot.lane.b32.xlu0 %v313_v44, %s473_s14  ;;  %330 = vrot.lane.b32.xlu1 %v312_v41, %s474_s0 }
 0x404   :  { %v317_v45 = vpop.permute.xlu0 %316 }
 0x405   :  { %346 = vst.msk [vmem:[#allocation2] sm:$0xff] %vm52_vm0, %v317_v45  ;;  %v336_v11 = vsel %vm52_vm0, %v317_v45, %v561_v61 }
 0x407   :  { %332 = vrot.lane.b32.xlu0 %v313_v44, %s474_s0 }
 0x471   :  { %v325_v1 = vpop.permute.xlu1 %324 }
 0x472   :  { %v339_v46 = vsel %vm338_vm1, %v336_v11, %v325_v1 }
 0x475   :  { %v327_v47 = vpop.permute.xlu0 %326  ;;  %v331_v48 = vpop.permute.xlu1 %330 }
 0x476   :  { %v342_v49 = vsel %vm341_vm2, %v339_v46, %v331_v48  ;;  %v340_v51 = vsel %vm338_vm1, %v337_v50, %v327_v47 }
 0x477   :  { %344 = vst [vmem:[%s613_s5] sm:$0xff] %v342_v49 }
 0x479   :  { %v333_v52 = vpop.permute.xlu0 %332 }
 0x47a   :  { %v343_v53 = vsel %vm341_vm2, %v340_v51, %v333_v52 }
 0x47b   :  { %345 = vst [vmem:[%s613_s5 + $0x8] sm:$0xff] %v343_v53 }
 0x47c   :  { %354 = vsyncpa [#allocation5], 1 }
 0x47d   :  { %355 = vsyncpa [#allocation7], 1 }

</bundles_post_ra>
